<compile_context>
chip_gen: v7x
topology: tpu7x:2x2x1
jax: 0.10.0
libtpu: 0.0.40
codegen_flags: <defaults>
</compile_context>

<pallas_src>
import numpy as np
import jax
import jax.numpy as jnp
from jax.experimental import pallas as pl
from jax.experimental.pallas import tpu as pltpu

# ------------------------- configuration (small, deterministic) ----------------
N_RESIDUES = 16
N_DOMAINS = 4
B_WIN = 4            # "B" in the torch module (window size)
S_WIN = 2            # "S" in the torch module (stride)
BATCH = 2
HIDDEN = 32
LATENT_DIM = 3 * N_DOMAINS
N_PAIRS = N_RESIDUES // 2        # residues 2j, 2j+1 share the same window pair


def _r8(n):
    return ((n + 7) // 8) * 8


# Packed parameter slab layout (SLAB_ROWS x 32 lanes, f32); 8-row aligned sections
ROW_W1 = 0                           # (LATENT_DIM, HIDDEN)
ROW_B1 = _r8(LATENT_DIM)             # 16 : (1, HIDDEN)
ROW_W2 = ROW_B1 + 8                  # 24 : (HIDDEN, 3*N_DOMAINS), local_frame folded in
ROW_B2 = ROW_W2 + _r8(HIDDEN)        # 56 : (1, 3*N_DOMAINS)
ROW_WINA = ROW_B2 + 8                # 64 : win_weights[0:8]  (N_PAIRS, N_DOMAINS)
ROW_WINB = ROW_WINA + _r8(N_PAIRS)   # 72 : win_weights[1:9]  (N_PAIRS, N_DOMAINS)
ROW_ATOM = ROW_WINB + _r8(N_PAIRS)   # 80 : atoms packed (N_PAIRS, 18) = 2 residues/row
SLAB_ROWS = ROW_ATOM + _r8(N_PAIRS)  # 88
SLAB_LANES = HIDDEN                  # 32 (>= 3*N_DOMAINS, 18, N_DOMAINS)


# ------------------------------ fused Pallas kernel ----------------------------
def _net_kernel(slab_ref, latent_ref, attn_ref, out_ref):
    # slab_ref  : (SLAB_ROWS, 32) packed constants (see layout above)
    # latent_ref: (BATCH, LATENT_DIM)
    # attn_ref  : (N_PAIRS, 2*N_DOMAINS)   -> reshaped to (N_RESIDUES, N_DOMAINS)
    # out_ref   : (BATCH, N_PAIRS, 24)     lanes 0:18 structure, 18:24 translation

    # ---- window product + softmax on the 8 unique window pairs (VPU + EUP) ----
    win_a = slab_ref[ROW_WINA:ROW_WINA + N_PAIRS, 0:N_DOMAINS]
    win_b = slab_ref[ROW_WINB:ROW_WINB + N_PAIRS, 0:N_DOMAINS]
    prod8 = win_a * win_b                                       # (8, 4)
    m = jnp.max(prod8, axis=-1, keepdims=True)
    e = jnp.exp(prod8 - m)
    denom = jnp.sum(e, axis=-1, keepdims=True)
    attn8 = e * pl.reciprocal(denom, approx=False)              # exact: keeps 1e-5 tol
    # residues 2j and 2j+1 share attn8[j]; repeat done lane-wise, reshaped in wrapper
    attn_ref[...] = jnp.concatenate([attn8, attn8], axis=-1)    # (8, 8)

    # ---- MLP translation on the MXU (f32): Linear -> ReLU -> Linear(.@lf folded) ----
    w1 = slab_ref[ROW_W1:ROW_W1 + LATENT_DIM, 0:HIDDEN]         # (12, 32)
    b1 = slab_ref[ROW_B1:ROW_B1 + 1, 0:HIDDEN]                  # (1, 32)
    w2 = slab_ref[ROW_W2:ROW_W2 + HIDDEN, 0:3 * N_DOMAINS]      # (32, 12) folded
    b2 = slab_ref[ROW_B2:ROW_B2 + 1, 0:3 * N_DOMAINS]           # (1, 12)  folded
    h = jnp.dot(latent_ref[...], w1, preferred_element_type=jnp.float32) + b1
    h = jnp.maximum(h, 0.0)
    # tvec[b, 3d+j] = translation vector (domain d, coord j) -- local frame folded in
    tvec = jnp.dot(h, w2, preferred_element_type=jnp.float32) + b2   # (BATCH, 12)

    batch = tvec.shape[0]

    # ---- deform: per-pair translation for BOTH batches packed over lanes ----
    # tres[:, 3b:3b+3] = attn8 @ tvec[b].reshape(4,3); done as 4 broadcast-FMAs
    tres = jnp.zeros((N_PAIRS, 3 * batch), jnp.float32)
    for d in range(N_DOMAINS):                                  # static, 4
        tv_d = jnp.concatenate(
            [tvec[b:b + 1, 3 * d:3 * d + 3] for b in range(batch)], axis=-1)  # (1, 3*B)
        tres = tres + attn8[:, d:d + 1] * tv_d

    atom18 = slab_ref[ROW_ATOM:ROW_ATOM + N_PAIRS, 0:18]        # (8, 18): 6 atoms/row

    for b in range(batch):                                      # static, BATCH = 2
        t = tres[:, 3 * b:3 * b + 3]                            # (8, 3)
        rep6 = jnp.concatenate([t, t, t, t, t, t], axis=-1)     # (8, 18) per-atom bcast
        rep2 = jnp.concatenate([t, t], axis=-1)                 # (8, 6)  per-residue
        out_ref[b] = jnp.concatenate([atom18 + rep6, rep2], axis=-1)   # (8, 24)


# --------------------- one-time host-side parameter packing --------------------
def prepare_params(win_weights, bs_per_res, w1, b1, w2, b2, local_frame, atom_abs):
    """Folds local_frame into the 2nd linear layer and packs every per-call-constant
    parameter into one padded f32 slab.  Run once (outside jit); re-run if the
    torch parameters (weights / mlp / atoms) change."""
    bs = np.asarray(bs_per_res)
    expected = np.stack([np.arange(N_RESIDUES) // 2,
                         np.arange(N_RESIDUES) // 2 + 1], axis=1)
    # For B=4, S=2: residues 2j and 2j+1 both use windows [j, j+1].
    assert np.array_equal(bs, expected), "window pattern mismatch for (B=4, S=2)"
    # TODO(synk): for other (B, S) configs, fall back to baking bs_per_res rows
    # into per-residue static slices instead of the winA*winB pair trick.

    lf_t = np.asarray(local_frame).T            # module stores transpose(local_frame)
    bd = np.zeros((3 * N_DOMAINS, 3 * N_DOMAINS), np.float32)
    for d in range(N_DOMAINS):
        bd[3 * d:3 * d + 3, 3 * d:3 * d + 3] = lf_t
    w2f = np.asarray(w2, np.float32) @ bd       # (HIDDEN, 12)
    b2f = np.asarray(b2, np.float32) @ bd       # (1, 12)

    win = np.asarray(win_weights, np.float32)   # (9, 4)
    atoms = np.asarray(atom_abs, np.float32).reshape(N_PAIRS, 18)

    slab = np.zeros((SLAB_ROWS, SLAB_LANES), np.float32)
    slab[ROW_W1:ROW_W1 + LATENT_DIM, 0:HIDDEN] = np.asarray(w1, np.float32)
    slab[ROW_B1, 0:HIDDEN] = np.asarray(b1, np.float32)[0]
    slab[ROW_W2:ROW_W2 + HIDDEN, 0:3 * N_DOMAINS] = w2f
    slab[ROW_B2, 0:3 * N_DOMAINS] = b2f[0]
    slab[ROW_WINA:ROW_WINA + N_PAIRS, 0:N_DOMAINS] = win[0:N_PAIRS]
    slab[ROW_WINB:ROW_WINB + N_PAIRS, 0:N_DOMAINS] = win[1:N_PAIRS + 1]
    slab[ROW_ATOM:ROW_ATOM + N_PAIRS, 0:18] = atoms
    return jnp.asarray(slab)


# ------------------------------ wrapper -----------------------------------------
def net_forward(param_slab, x, edge_index, edge_attr, latent_variables):
    # x / edge_index / edge_attr accepted but unused, exactly like the torch forward.
    del x, edge_index, edge_attr
    batch = latent_variables.shape[0]

    attn2, packed = pl.pallas_call(
        _net_kernel,
        out_shape=(
            jax.ShapeDtypeStruct((N_PAIRS, 2 * N_DOMAINS), jnp.float32),
            jax.ShapeDtypeStruct((batch, N_PAIRS, 24), jnp.float32),
        ),
        in_specs=[pl.BlockSpec(memory_space=pltpu.MemorySpace.VMEM)] * 2,
        out_specs=(
            pl.BlockSpec(memory_space=pltpu.MemorySpace.VMEM),
            pl.BlockSpec(memory_space=pltpu.MemorySpace.VMEM),
        ),
    )(param_slab, latent_variables)

    # lane-packed outputs -> module shapes (row-major identical reshapes)
    attn = attn2.reshape(N_RESIDUES, N_DOMAINS)
    new_structure = packed[:, :, 0:18].reshape(batch, 3 * N_RESIDUES, 3)
    translations = packed[:, :, 18:24].reshape(batch, N_RESIDUES, 3)
    return new_structure, attn, translations


net_forward_jit = jax.jit(net_forward)


# ------------------------------ pure-JAX reference ------------------------------
def _reference(win_weights, bs_per_res, latent, w1, b1, w2, b2, lf_t, atom_abs):
    gathered = win_weights[bs_per_res]                  # (N_res, nb_per_res, N_dom)
    prod = jnp.prod(gathered, axis=1)
    attn = jax.nn.softmax(prod, axis=1)
    h = jnp.maximum(latent @ w1 + b1, 0.0)
    scalars = (h @ w2 + b2).reshape(latent.shape[0], N_DOMAINS, 3)
    tvec = jnp.einsum('bdk,kj->bdj', scalars, lf_t)
    tres = jnp.einsum('rd,bdj->brj', attn, tvec)
    new = atom_abs[None] + jnp.repeat(tres, 3, axis=1)
    return new, attn, tres


# ------------------------------------ main ---------------------------------------
if __name__ == "__main__":
    key = jax.random.PRNGKey(0)
    ks = jax.random.split(key, 8)

    # ---- bs_per_res exactly as in the torch __init__ ----
    nb_per_res = B_WIN // S_WIN
    balance = B_WIN - S_WIN + 1
    bs_np = np.empty((N_RESIDUES, nb_per_res), dtype=np.int32)
    for i in range(N_RESIDUES):
        start = max(i + balance - B_WIN, 0) // S_WIN
        if max(i + balance - B_WIN, 0) % S_WIN != 0:
            start += 1
        bs_np[i, :] = np.arange(start, start + nb_per_res)
    nb_windows = int(bs_np[-1, -1]) + 1
    bs_per_res = jnp.asarray(bs_np, dtype=jnp.int32)

    # ---- deterministic parameter init (synthetic; torch init uses ones for `weights`) ----
    win_weights = jax.random.uniform(ks[0], (nb_windows, N_DOMAINS), jnp.float32, 0.5, 1.5)
    w1 = jax.random.normal(ks[1], (LATENT_DIM, HIDDEN), jnp.float32) * 0.2
    b1 = jax.random.normal(ks[2], (1, HIDDEN), jnp.float32) * 0.05
    w2 = jax.random.normal(ks[3], (HIDDEN, 3 * N_DOMAINS), jnp.float32) * 0.2
    b2 = jax.random.normal(ks[4], (1, 3 * N_DOMAINS), jnp.float32) * 0.05
    atom_abs = jax.random.normal(ks[5], (3 * N_RESIDUES, 3), jnp.float32)
    latent = jax.random.normal(ks[6], (BATCH, LATENT_DIM), jnp.float32)

    theta = 0.3  # orthonormal local frame (rows are orthonormal vectors)
    local_frame = jnp.array([[np.cos(theta), -np.sin(theta), 0.0],
                             [np.sin(theta),  np.cos(theta), 0.0],
                             [0.0,            0.0,           1.0]], dtype=jnp.float32)
    lf_t = local_frame.T   # module stores torch.transpose(local_frame, 0, 1)

    # unused graph inputs, kept only for forward-signature parity
    x = jax.random.normal(ks[7], (N_RESIDUES, 4), jnp.float32)
    edge_index = jnp.zeros((2, 8), jnp.int32)
    edge_attr = jnp.zeros((8, 1), jnp.float32)

    # one-time host-side fold + pack (outside jit)
    param_slab = prepare_params(win_weights, bs_np, w1, b1, w2, b2,
                                local_frame, atom_abs)

    new_structure, attn, translations = net_forward_jit(
        param_slab, x, edge_index, edge_attr, latent)
    jax.block_until_ready((new_structure, attn, translations))

    ref_struct, ref_attn, ref_trans = _reference(
        win_weights, bs_per_res, latent, w1, b1, w2, b2, lf_t, atom_abs)

    assert new_structure.shape == (BATCH, 3 * N_RESIDUES, 3)
    assert attn.shape == (N_RESIDUES, N_DOMAINS)
    assert translations.shape == (BATCH, N_RESIDUES, 3)
    np.testing.assert_allclose(np.asarray(attn), np.asarray(ref_attn), rtol=1e-4, atol=1e-5)
    np.testing.assert_allclose(np.asarray(translations), np.asarray(ref_trans), rtol=1e-4, atol=1e-5)
    np.testing.assert_allclose(np.asarray(new_structure), np.asarray(ref_struct), rtol=1e-4, atol=1e-5)

    print("KERNEL_OK")
</pallas_src>

<mosaic_0001>
module attributes {stable_mosaic.version = 11 : i64} {
  func.func @_net_kernel(%arg0: memref<88x32xf32, #tpu.memory_space<vmem>>, %arg1: memref<2x12xf32, #tpu.memory_space<vmem>>, %arg2: memref<8x8xf32, #tpu.memory_space<vmem>>, %arg3: memref<2x8x24xf32, #tpu.memory_space<vmem>>) attributes {dimension_semantics = [], scalar_prefetch = 0 : i64, scratch_operands = 0 : i64, tpu.core_type = #tpu.core_type<tc>} {
    %c64 = arith.constant 64 : index
    %c0 = arith.constant 0 : index
    %0 = vector.load %arg0[%c64, %c0] : memref<88x32xf32, #tpu.memory_space<vmem>>, vector<8x4xf32>
    %c72 = arith.constant 72 : index
    %c0_0 = arith.constant 0 : index
    %1 = vector.load %arg0[%c72, %c0_0] : memref<88x32xf32, #tpu.memory_space<vmem>>, vector<8x4xf32>
    %2 = arith.mulf %0, %1 : vector<8x4xf32>
    %cst = arith.constant dense<0xFF800000> : vector<8xf32>
    %3 = vector.multi_reduction <maximumf>, %2, %cst [1] : vector<8x4xf32> to vector<8xf32>
    %4 = vector.shape_cast %3 : vector<8xf32> to vector<8x1xf32>
    %5 = vector.broadcast %4 : vector<8x1xf32> to vector<8x4xf32>
    %6 = arith.subf %2, %5 : vector<8x4xf32>
    %7 = math.exp %6 : vector<8x4xf32>
    %cst_1 = arith.constant dense<0.000000e+00> : vector<8xf32>
    %8 = vector.multi_reduction <add>, %7, %cst_1 [1] : vector<8x4xf32> to vector<8xf32>
    %9 = vector.shape_cast %8 : vector<8xf32> to vector<8x1xf32>
    %10 = tpu.reciprocal %9 : vector<8x1xf32> -> vector<8x1xf32>
    %11 = vector.broadcast %10 : vector<8x1xf32> to vector<8x4xf32>
    %12 = arith.mulf %7, %11 : vector<8x4xf32>
    %13 = tpu.concatenate %12, %12 in 1 : vector<8x4xf32>, vector<8x4xf32> -> vector<8x8xf32>
    %c0_2 = arith.constant 0 : index
    %c0_3 = arith.constant 0 : index
    %14 = vector.load %arg2[%c0_2, %c0_3] : memref<8x8xf32, #tpu.memory_space<vmem>>, vector<8x8xf32>
    tpu.vector_store %arg2[%c0_2, %c0_3], %13 {strides = array<i32>} : memref<8x8xf32, #tpu.memory_space<vmem>>, vector<8x8xf32>,
    %c0_4 = arith.constant 0 : index
    %c0_5 = arith.constant 0 : index
    %15 = vector.load %arg0[%c0_4, %c0_5] : memref<88x32xf32, #tpu.memory_space<vmem>>, vector<12x32xf32>
    %c16 = arith.constant 16 : index
    %c0_6 = arith.constant 0 : index
    %16 = vector.load %arg0[%c16, %c0_6] : memref<88x32xf32, #tpu.memory_space<vmem>>, vector<1x32xf32>
    %c24 = arith.constant 24 : index
    %c0_7 = arith.constant 0 : index
    %17 = vector.load %arg0[%c24, %c0_7] : memref<88x32xf32, #tpu.memory_space<vmem>>, vector<32x12xf32>
    %c56 = arith.constant 56 : index
    %c0_8 = arith.constant 0 : index
    %18 = vector.load %arg0[%c56, %c0_8] : memref<88x32xf32, #tpu.memory_space<vmem>>, vector<1x12xf32>
    %c0_9 = arith.constant 0 : index
    %c0_10 = arith.constant 0 : index
    %19 = vector.load %arg1[%c0_9, %c0_10] : memref<2x12xf32, #tpu.memory_space<vmem>>, vector<2x12xf32>
    %cst_11 = arith.constant dense<0.000000e+00> : vector<2x32xf32>
    %20 = tpu.matmul %19, %15, %cst_11 {dimension_numbers = #tpu.dot_dimension_numbers<[1], [0], [0], [1], [0, 0, 1, 1], [], []>} : vector<2x12xf32>, vector<12x32xf32>, vector<2x32xf32> -> vector<2x32xf32>
    %21 = vector.broadcast %16 : vector<1x32xf32> to vector<2x32xf32>
    %22 = arith.addf %20, %21 : vector<2x32xf32>
    %cst_12 = arith.constant 0.000000e+00 : f32
    %23 = vector.broadcast %cst_12 : f32 to vector<2x32xf32>
    %24 = arith.maximumf %22, %23 : vector<2x32xf32>
    %cst_13 = arith.constant dense<0.000000e+00> : vector<2x12xf32>
    %25 = tpu.matmul %24, %17, %cst_13 {dimension_numbers = #tpu.dot_dimension_numbers<[1], [0], [0], [1], [0, 0, 1, 1], [], []>} : vector<2x32xf32>, vector<32x12xf32>, vector<2x12xf32> -> vector<2x12xf32>
    %26 = vector.broadcast %18 : vector<1x12xf32> to vector<2x12xf32>
    %27 = arith.addf %25, %26 : vector<2x12xf32>
    %cst_14 = arith.constant 0.000000e+00 : f32
    %28 = vector.broadcast %cst_14 : f32 to vector<8x6xf32>
    %29 = vector.extract_strided_slice %27 {offsets = [0, 0], sizes = [1, 3], strides = [1, 1]} : vector<2x12xf32> to vector<1x3xf32>
    %30 = vector.extract_strided_slice %27 {offsets = [1, 0], sizes = [1, 3], strides = [1, 1]} : vector<2x12xf32> to vector<1x3xf32>
    %31 = tpu.concatenate %29, %30 in 1 : vector<1x3xf32>, vector<1x3xf32> -> vector<1x6xf32>
    %32 = vector.extract_strided_slice %12 {offsets = [0, 0], sizes = [8, 1], strides = [1, 1]} : vector<8x4xf32> to vector<8x1xf32>
    %33 = vector.broadcast %32 : vector<8x1xf32> to vector<8x6xf32>
    %34 = vector.broadcast %31 : vector<1x6xf32> to vector<8x6xf32>
    %35 = arith.mulf %33, %34 : vector<8x6xf32>
    %36 = arith.addf %28, %35 : vector<8x6xf32>
    %37 = vector.extract_strided_slice %27 {offsets = [0, 3], sizes = [1, 3], strides = [1, 1]} : vector<2x12xf32> to vector<1x3xf32>
    %38 = vector.extract_strided_slice %27 {offsets = [1, 3], sizes = [1, 3], strides = [1, 1]} : vector<2x12xf32> to vector<1x3xf32>
    %39 = tpu.concatenate %37, %38 in 1 : vector<1x3xf32>, vector<1x3xf32> -> vector<1x6xf32>
    %40 = vector.extract_strided_slice %12 {offsets = [0, 1], sizes = [8, 1], strides = [1, 1]} : vector<8x4xf32> to vector<8x1xf32>
    %41 = vector.broadcast %40 : vector<8x1xf32> to vector<8x6xf32>
    %42 = vector.broadcast %39 : vector<1x6xf32> to vector<8x6xf32>
    %43 = arith.mulf %41, %42 : vector<8x6xf32>
    %44 = arith.addf %36, %43 : vector<8x6xf32>
    %45 = vector.extract_strided_slice %27 {offsets = [0, 6], sizes = [1, 3], strides = [1, 1]} : vector<2x12xf32> to vector<1x3xf32>
    %46 = vector.extract_strided_slice %27 {offsets = [1, 6], sizes = [1, 3], strides = [1, 1]} : vector<2x12xf32> to vector<1x3xf32>
    %47 = tpu.concatenate %45, %46 in 1 : vector<1x3xf32>, vector<1x3xf32> -> vector<1x6xf32>
    %48 = vector.extract_strided_slice %12 {offsets = [0, 2], sizes = [8, 1], strides = [1, 1]} : vector<8x4xf32> to vector<8x1xf32>
    %49 = vector.broadcast %48 : vector<8x1xf32> to vector<8x6xf32>
    %50 = vector.broadcast %47 : vector<1x6xf32> to vector<8x6xf32>
    %51 = arith.mulf %49, %50 : vector<8x6xf32>
    %52 = arith.addf %44, %51 : vector<8x6xf32>
    %53 = vector.extract_strided_slice %27 {offsets = [0, 9], sizes = [1, 3], strides = [1, 1]} : vector<2x12xf32> to vector<1x3xf32>
    %54 = vector.extract_strided_slice %27 {offsets = [1, 9], sizes = [1, 3], strides = [1, 1]} : vector<2x12xf32> to vector<1x3xf32>
    %55 = tpu.concatenate %53, %54 in 1 : vector<1x3xf32>, vector<1x3xf32> -> vector<1x6xf32>
    %56 = vector.extract_strided_slice %12 {offsets = [0, 3], sizes = [8, 1], strides = [1, 1]} : vector<8x4xf32> to vector<8x1xf32>
    %57 = vector.broadcast %56 : vector<8x1xf32> to vector<8x6xf32>
    %58 = vector.broadcast %55 : vector<1x6xf32> to vector<8x6xf32>
    %59 = arith.mulf %57, %58 : vector<8x6xf32>
    %60 = arith.addf %52, %59 : vector<8x6xf32>
    %c80 = arith.constant 80 : index
    %c0_15 = arith.constant 0 : index
    %61 = vector.load %arg0[%c80, %c0_15] : memref<88x32xf32, #tpu.memory_space<vmem>>, vector<8x18xf32>
    %62 = vector.extract_strided_slice %60 {offsets = [0, 0], sizes = [8, 3], strides = [1, 1]} : vector<8x6xf32> to vector<8x3xf32>
    %63 = tpu.concatenate %62, %62, %62, %62, %62, %62 in 1 : vector<8x3xf32>, vector<8x3xf32>, vector<8x3xf32>, vector<8x3xf32>, vector<8x3xf32>, vector<8x3xf32> -> vector<8x18xf32>
    %64 = tpu.concatenate %62, %62 in 1 : vector<8x3xf32>, vector<8x3xf32> -> vector<8x6xf32>
    %65 = arith.addf %61, %63 : vector<8x18xf32>
    %66 = tpu.concatenate %65, %64 in 1 : vector<8x18xf32>, vector<8x6xf32> -> vector<8x24xf32>
    %c0_16 = arith.constant 0 : index
    %c0_17 = arith.constant 0 : index
    %c0_18 = arith.constant 0 : index
    %67 = vector.load %arg3[%c0_16, %c0_17, %c0_18] : memref<2x8x24xf32, #tpu.memory_space<vmem>>, vector<1x8x24xf32>
    %68 = vector.shape_cast %67 : vector<1x8x24xf32> to vector<8x24xf32>
    %69 = vector.shape_cast %66 : vector<8x24xf32> to vector<1x8x24xf32>
    tpu.vector_store %arg3[%c0_16, %c0_17, %c0_18], %69 {strides = array<i32>} : memref<2x8x24xf32, #tpu.memory_space<vmem>>, vector<1x8x24xf32>,
    %70 = vector.extract_strided_slice %60 {offsets = [0, 3], sizes = [8, 3], strides = [1, 1]} : vector<8x6xf32> to vector<8x3xf32>
    %71 = tpu.concatenate %70, %70, %70, %70, %70, %70 in 1 : vector<8x3xf32>, vector<8x3xf32>, vector<8x3xf32>, vector<8x3xf32>, vector<8x3xf32>, vector<8x3xf32> -> vector<8x18xf32>
    %72 = tpu.concatenate %70, %70 in 1 : vector<8x3xf32>, vector<8x3xf32> -> vector<8x6xf32>
    %73 = arith.addf %61, %71 : vector<8x18xf32>
    %74 = tpu.concatenate %73, %72 in 1 : vector<8x18xf32>, vector<8x6xf32> -> vector<8x24xf32>
    %c1 = arith.constant 1 : index
    %c0_19 = arith.constant 0 : index
    %c0_20 = arith.constant 0 : index
    %75 = vector.load %arg3[%c1, %c0_19, %c0_20] : memref<2x8x24xf32, #tpu.memory_space<vmem>>, vector<1x8x24xf32>
    %76 = vector.shape_cast %75 : vector<1x8x24xf32> to vector<8x24xf32>
    %77 = vector.shape_cast %74 : vector<8x24xf32> to vector<1x8x24xf32>
    tpu.vector_store %arg3[%c1, %c0_19, %c0_20], %77 {strides = array<i32>} : memref<2x8x24xf32, #tpu.memory_space<vmem>>, vector<1x8x24xf32>,
    return
  }
}

</mosaic_0001>

<bundles_post_ra>
// kernel: net_forward.1
= control target key start
LH: loop header
LB: loop body
LE: loop exit
PB: predicated region body
PF: predicated region fallthrough
CT: control target
= control target key end

     0   :  { %vm52_vm0 = vcmask 1043456   ;;  %v398_v0 = vmov 0.0|0.0   ;;  %vm399_vm1 = vmmov 1   ;;  %vm16_vm3 = vcmask 31744   ;;  %s404_s4 = smov 4   ;;  %s407_s7 = smov 125   ;;  %s498_s0 = inlined_call_operand.vmem [shape: f32[88,32], index: 0, kind: input, shape index: {}]   ;;  %s499_s1 = inlined_call_operand.vmem [shape: f32[2,12], index: 1, kind: input, shape index: {}]   ;;  %s500_s2 = inlined_call_operand.vmem [shape: f32[8,8], index: 2, kind: output, shape index: {0}]   ;;  %s501_s3 = inlined_call_operand.vmem [shape: f32[2,8,24], index: 3, kind: output, shape index: {1}]  }
   0x1   :  { %361 = vmatprep.subr.bf16.mxu0 %v398_v0  ;;  %v35_v1 = vld [vmem:[%s498_s0] sm:$0xff]  ;;  %v36_v2 = vld [vmem:[%s498_s0 + $0x8] sm:$0xf]  ;;  %vm363_vm2 = vmpackc.low %vm52_vm0, %vm399_vm1  ;;  %365 = vmatprep.subr.bf16.mxu1 %v398_v0  ;;  %vm400_vm4 = vmmov 0   ;;  %v401_v6 = vmov 0.0   ;;  %vm48_vm5 = vcmask 97280   ;;  %v216_v45 = vlaneseq }
   0x2   :  { %v362_v3 = vpack.c.bf16 %v36_v2, %v35_v1  ;;  %v13_v4 = vld [vmem:[%s498_s0 + $0x40] sm:$0xff]  ;;  %v14_v5 = vld [vmem:[%s498_s0 + $0x48] sm:$0xff]  ;;  %347 = vmatprep.mubr.msk.f32.mxu0 %vm400_vm4, %v401_v6  ;;  %358 = vmatprep.mubr.msk.f32.mxu1 %vm400_vm4, %v401_v6  ;;  %v38_v10 = vld [vmem:[%s498_s0 + $0x18] sm:$0xff]  ;;  %v402_v21 = vmov 2   ;;  %v403_v22 = vmov 0   ;;  %vm131_vm6 = vcmask 261120  }
   0x3   :  { %v15_v7 = vmul.f32 %v14_v5, %v13_v4  ;;  %v43_v8 = vld [vmem:[%s499_s1] sm:$0x3]  ;;  %v40_v13 = vld [vmem:[%s498_s0 + $0x28] sm:$0xff]  ;;  %v41_v14 = vld [vmem:[%s498_s0 + $0x30] sm:$0xff]  ;;  %391 = vset.pattern.permute.xlu0 %v402_v21  ;;  %389 = vset.pattern.permute.xlu1 %v403_v22  ;;  %v405_v31 = vmov 1   ;;  %v406_v32 = vmov 3  }
   0x4   :  { %364 = vmatpush3.bf16.msk.msra.mxu0 %vm363_vm2, %v362_v3  ;;  %v39_v11 = vld [vmem:[%s498_s0 + $0x20] sm:$0xff]  ;;  %v369_v15 = vpack.c.bf16 %v41_v14, %v40_v13  ;;  %v329_v23 = vld [vmem:[%s498_s0 + $0x10] ss:$0 sm:$0xff]  ;;  %v332_v33 = vld [vmem:[%s498_s0 + $0x38] ss:$0 sm:$0xff]  ;;  %s408_s8 = smov 122  }
   0x5   :  { %v17_v9 = vsel %vm16_vm3, %v15_v7, -inf  ;;  %v366_v12 = vpack.c.bf16 %v39_v11, %v38_v10  ;;  %s409_s9 = smov 119   ;;  %vm33_vm7 = vcmask 64512   ;;  %s410_s10 = smov 3   ;;  %v217_v47 = vshrl.u32 %v216_v45, 7 }
   0x6   :  { %18 = vmax.xlane.f32.xlu0 %v17_v9  ;;  %vm210_vm8 = vcmask 23552   ;;  %s412_s13 = smov 6   ;;  %s413_s14 = smov 9   ;;  %vm289_vm9 = vcmask 48128   ;;  %vm291_vm10 = vcmask 72704   ;;  %vm294_vm11 = vcmask 121856  }
   0x7   :  { %348 = vmatmul.mubr.msk.f32.vlgmr.msra.gmra.mrb[0].mxu0 %vm48_vm5, %v43_v8  ;;  %367 = vmatpush3.bf16.msra.mxu1 %v366_v12  ;;  %v218_v49 = vsub.s32 0, %v217_v47  ;;  %s414_s15 = smov 15   ;;  %s415_s16 = smov 18   ;;  %vm301_vm12 = vcmask 146432   ;;  %vm303_vm13 = vcmask 195584  }
   0x8   :  { %368 = vmatprep.subr.bf16.mxu1 %v398_v0 }
   0xb   :  { %370 = vmatpush3.bf16.msra.mxu1 %v369_v15 }
  0x93   :  { %v19_v16 = vpop.xlane.xlu0 %18 }
  0x94   :  { %v20_v17 = vsub.f32 %v15_v7, %v19_v16 }
  0x96   :  { %v21_v18 = vmul.f32 1.442695, %v20_v17 }
  0x98   :  { %394 = vpow2.f32 %v21_v18 }
  0xa2   :  { %v395_v19 = vpop.eup %394 }
  0xa3   :  { %v23_v20 = vsel %vm16_vm3, %v395_v19, 0.0 }
  0xa4   :  { %24 = vadd.xlane.f32.xlu0 %v23_v20 }
  0xda   :  { %v122_v24 = vpop.f32.mrb[0].mxu0 }
  0xdb   :  { %v123_v25 = vadd.f32 %v329_v23, %v122_v24  ;;  %v349_v26 = vpop.f32.mrb[1].mxu0 }
  0xdd   :  { %v126_v27 = vmax.f32 %v123_v25, 0.0 }
  0xdf   :  { %359 = vmatmul.mubr.msk.f32.vlgmr.msra.gmra.mrb[0].mxu1 %vm131_vm6, %v126_v27 }
 0x131   :  { %v25_v28 = vpop.xlane.xlu0 %24 }
 0x132   :  { %396 = vrcp.f32 %v25_v28 }
 0x13c   :  { %v397_v29 = vpop.eup %396 }
 0x13d   :  { %v27_v30 = vmul.f32 %v397_v29, %v395_v19  ;;  %v271_v19 = vld [vmem:[%s498_s0 + $0x50] sm:$0xff] }
 0x13f   :  { %245 = vperm.xlu0 %391, %v27_v30   ;;  %213 = vperm.xlu1 %389, %v27_v30  }
 0x143   :  { %29 = vrot.lane.b32.xlu0 %v27_v30, %s404_s4  ;;  %390 = vset.pattern.permute.xlu1 %v405_v31 }
 0x144   :  { %228 = vperm.xlu1 %390, %v27_v30   ;;  %393 = vset.pattern.permute.xlu0 %v406_v32 }
 0x148   :  { %392 = vset.pattern.permute.xlu1 %v406_v32 }
 0x149   :  { %262 = vperm.xlu1 %392, %v27_v30  }
 0x1b2   :  { %v201_v34 = vpop.f32.mrb[0].mxu1 }
 0x1b3   :  { %v202_v35 = vadd.f32 %v332_v33, %v201_v34  ;;  %v360_v36 = vpop.f32.mrb[1].mxu1 }
 0x1b5   :  { %222 = vrot.lane.b32.xlu1 %v202_v35, %s407_s7  ;;  %v206_v38 = vrot.slane %v202_v35, 1 }
 0x1b9   :  { %237 = vrot.lane.b32.xlu1 %v202_v35, %s408_s8 }
 0x1bd   :  { %254 = vrot.lane.b32.xlu1 %v202_v35, %s409_s9 }
 0x1be   :  { %v246_v37 = vpop.permute.xlu0 %245  ;;  %v214_v41 = vpop.permute.xlu1 %213 }
 0x1c1   :  { %207 = vrot.lane.b32.xlu1 %v206_v38, %s410_s10 }
 0x1c2   :  { %v30_v39 = vpop.permute.xlu0 %29 }
 0x1c3   :  { %v32_v40 = vsel %vm16_vm3, %v27_v30, %v30_v39  ;;  %v229_v42 = vpop.permute.xlu1 %228 }
 0x1c4   :  { %34 = vst.msk [vmem:[%s500_s2] sm:$0xff] %vm33_vm7, %v32_v40  ;;  %s411_s2 = smov 12  }
 0x1c5   :  { %240 = vrot.lane.b32.xlu1 %v206_v38, %s407_s7 }
 0x1c8   :  { %v263_v43 = vpop.permute.xlu1 %262 }
 0x1c9   :  { %257 = vrot.lane.b32.xlu1 %v206_v38, %s408_s8 }
 0x227   :  { %v223_v44 = vpop.permute.xlu1 %222 }
 0x228   :  { %v226_v51 = vsel %vm210_vm8, %v223_v44, %v206_v38 }
 0x229   :  { %v234_v54 = vrot.slane %v226_v51, %v218_v49 }
 0x22b   :  { %v238_v46 = vpop.permute.xlu1 %237  ;;  %v235_v59 = vmul.f32 %v234_v54, %v229_v42 }
 0x22f   :  { %v255_v48 = vpop.permute.xlu1 %254 }
 0x233   :  { %v208_v50 = vpop.permute.xlu1 %207 }
 0x234   :  { %v211_v52 = vsel %vm210_vm8, %v202_v35, %v208_v50 }
 0x235   :  { %v219_v53 = vrot.slane %v211_v52, %v218_v49 }
 0x237   :  { %v241_v55 = vpop.permute.xlu1 %240  ;;  %v220_v57 = vmul.f32 %v219_v53, %v214_v41 }
 0x238   :  { %v243_v56 = vsel %vm210_vm8, %v238_v46, %v241_v55 }
 0x239   :  { %v251_v58 = vrot.slane %v243_v56, %v218_v49  ;;  %v236_v63 = vadd.f32 %v235_v59, %v220_v57 }
 0x23b   :  { %v252_v60 = vmul.f32 %v251_v58, %v246_v37  ;;  %v258_v61 = vpop.permute.xlu1 %257 }
 0x23c   :  { %v260_v62 = vsel %vm210_vm8, %v255_v48, %v258_v61 }
 0x23d   :  { %v268_v0 = vrot.slane %v260_v62, %v218_v49  ;;  %v253_v1 = vadd.f32 %v252_v60, %v236_v63 }
 0x23f   :  { %v269_v2 = vmul.f32 %v268_v0, %v263_v43 }
 0x241   :  { %v270_v3 = vadd.f32 %v269_v2, %v253_v1 }
 0x243   :  { %282 = vrot.lane.b32.xlu0 %v270_v3, %s411_s2  ;;  %273 = vrot.lane.b32.xlu1 %v270_v3, %s410_s10 }
 0x247   :  { %305 = vrot.lane.b32.xlu1 %v270_v3, %s407_s7 }
 0x24b   :  { %276 = vrot.lane.b32.xlu1 %v270_v3, %s412_s13 }
 0x24f   :  { %279 = vrot.lane.b32.xlu1 %v270_v3, %s413_s14 }
 0x253   :  { %285 = vrot.lane.b32.xlu1 %v270_v3, %s414_s15 }
 0x2b5   :  { %v274_v4 = vpop.permute.xlu1 %273  ;;  %v283_v14 = vpop.permute.xlu0 %282 }
 0x2b6   :  { %v288_v5 = vsel %vm210_vm8, %v270_v3, %v274_v4 }
 0x2b7   :  { %298 = vrot.lane.b32.xlu1 %v288_v5, %s415_s16 }
 0x2b9   :  { %v306_v6 = vpop.permute.xlu1 %305 }
 0x2ba   :  { %v308_v7 = vsel %vm210_vm8, %v306_v6, %v270_v3 }
 0x2bb   :  { %315 = vrot.lane.b32.xlu0 %v308_v7, %s415_s16  ;;  %v309_v8 = vsel %vm289_vm9, %v308_v7, %v274_v4 }
 0x2bd   :  { %v277_v9 = vpop.permute.xlu1 %276 }
 0x2be   :  { %v290_v11 = vsel %vm289_vm9, %v288_v5, %v277_v9  ;;  %v310_v16 = vsel %vm291_vm10, %v309_v8, %v277_v9 }
 0x2c1   :  { %v280_v10 = vpop.permute.xlu1 %279 }
 0x2c2   :  { %v292_v12 = vsel %vm291_vm10, %v290_v11, %v280_v10  ;;  %v311_v18 = vsel %vm48_vm5, %v310_v16, %v280_v10 }
 0x2c3   :  { %v293_v15 = vsel %vm48_vm5, %v292_v12, %v283_v14  ;;  %v312_v21 = vsel %vm294_vm11, %v311_v18, %v283_v14 }
 0x2c4   :  { %v313_v24 = vadd.f32 %v312_v21, %v271_v19 }
 0x2c5   :  { %v286_v13 = vpop.permute.xlu1 %285 }
 0x2c6   :  { %v295_v17 = vsel %vm294_vm11, %v293_v15, %v286_v13 }
 0x2c7   :  { %v296_v20 = vadd.f32 %v295_v17, %v271_v19 }
 0x329   :  { %v299_v22 = vpop.permute.xlu1 %298 }
 0x32a   :  { %v302_v23 = vsel %vm301_vm12, %v296_v20, %v299_v22 }
 0x32b   :  { %304 = vst.msk [vmem:[%s501_s3] sm:$0xff] %vm303_vm13, %v302_v23 }
 0x32d   :  { %v316_v25 = vpop.permute.xlu0 %315 }
 0x32e   :  { %v318_v26 = vsel %vm301_vm12, %v313_v24, %v316_v25 }
 0x32f   :  { %334 = vst.msk [vmem:[%s501_s3 + $0x8] sm:$0xff] %vm303_vm13, %v318_v26 }

</bundles_post_ra>
